<compile_context>
chip_gen: v6e
topology: v6e:2x2x1
jax: 0.10.0
libtpu: 0.0.40
codegen_flags: <defaults>
</compile_context>

<pallas_src>
import jax
import jax.numpy as jnp
from jax import lax
from jax.experimental import pallas as pl
from jax.experimental.pallas import tpu as pltpu

EPS = 1e-5  # PyTorch nn.LayerNorm default


def _round_up(a: int, b: int) -> int:
    return ((a + b - 1) // b) * b


def _addnorm_kernel(x_ref, y_ref, gamma_ref, beta_ref, o_ref):
    # Residual add (dropout is identity in eval mode); accumulate in f32.
    x = x_ref[...].astype(jnp.float32)
    y = y_ref[...].astype(jnp.float32)
    z = x + y

    # Two-pass statistics over the full (unpadded) lane axis.  The block's
    # last dim is the true H, so jnp.mean divides by the correct count.
    mean = jnp.mean(z, axis=-1, keepdims=True)
    d = z - mean
    var = jnp.mean(d * d, axis=-1, keepdims=True)
    inv = lax.rsqrt(var + EPS)                      # (rows_tile, 1)

    g = gamma_ref[...].astype(jnp.float32)          # (1, H), VMEM-resident
    b = beta_ref[...].astype(jnp.float32)           # (1, H)

    # Fused scale/shift: o = (x+y) * (inv*gamma) + (beta - mean*inv*gamma).
    # Recomputing (x+y) lets the compiler drop the f32 z temporary early.
    scale = inv * g
    shift = b - mean * scale
    o_ref[...] = ((x + y) * scale + shift).astype(o_ref.dtype)


def add_norm(x, y, gamma, beta):
    """x, y: (..., H). gamma, beta: (H,). Returns same shape/dtype as x."""
    orig_shape = x.shape
    H = orig_shape[-1]
    rows = int(x.size) // H
    out_dtype = x.dtype
    itemsize = jnp.dtype(out_dtype).itemsize

    # Native sublane packing: 8 for f32, 16 for bf16, 32 for int8/fp8.
    sublane = max(8, 32 // max(itemsize, 1))

    # Chip-aware VMEM budget.
    try:
        vmem_cap = int(pltpu.get_tpu_info().vmem_capacity_bytes)
    except Exception:
        vmem_cap = 64 * 1024 * 1024  # conservative (v7x-sized) fallback

    budget_bytes = min(int(vmem_cap * 0.42), 48 * 1024 * 1024)
    vmem_limit = min(64 * 1024 * 1024, int(vmem_cap * 0.625))

    # Per-row VMEM: 6 double-buffered native-dtype I/O slabs (X, Y, O x 2
    # buffers) + ~2 single-buffered f32 temporaries inside the body.
    per_row_bytes = H * (6 * itemsize + 8)
    row_tile = max(sublane, (budget_bytes // per_row_bytes // sublane) * sublane)
    row_tile = min(row_tile, 1024)

    if rows <= sublane:
        # Tiny input: one full-extent block (allowed by the "equal full dim"
        # rule even when not a multiple of 8).
        row_tile = rows
    else:
        # Guarantee >= 2 grid steps so v7x's second TensorCore gets work.
        half_rows = _round_up(pl.cdiv(rows, 2), sublane)
        row_tile = min(row_tile, half_rows)

    grid = (pl.cdiv(rows, row_tile),)

    # Pure views: no HBM copies.
    x2 = x.reshape(rows, H)
    y2 = y.reshape(rows, H)
    g2 = gamma.reshape(1, H)
    b2 = beta.reshape(1, H)

    out = pl.pallas_call(
        _addnorm_kernel,
        out_shape=jax.ShapeDtypeStruct((rows, H), out_dtype),
        grid_spec=pltpu.PrefetchScalarGridSpec(
            num_scalar_prefetch=0,
            grid=grid,
            in_specs=[
                pl.BlockSpec((row_tile, H), lambda i: (i, 0)),   # X rows
                pl.BlockSpec((row_tile, H), lambda i: (i, 0)),   # Y rows
                # gamma/beta: whole array resident in VMEM (no per-step DMA).
                pl.BlockSpec(memory_space=pltpu.MemorySpace.VMEM),
                pl.BlockSpec(memory_space=pltpu.MemorySpace.VMEM),
            ],
            out_specs=pl.BlockSpec((row_tile, H), lambda i: (i, 0)),
        ),
        compiler_params=pltpu.CompilerParams(
            dimension_semantics=("parallel",),
            vmem_limit_bytes=vmem_limit,
        ),
    )(x2, y2, g2, b2)

    return out.reshape(orig_shape)


def _reference(x, y, gamma, beta):
    z = x.astype(jnp.float32) + y.astype(jnp.float32)
    mean = jnp.mean(z, axis=-1, keepdims=True)
    var = jnp.mean((z - mean) ** 2, axis=-1, keepdims=True)
    out = (z - mean) * lax.rsqrt(var + EPS) * gamma + beta
    return out.astype(x.dtype)


if __name__ == "__main__":
    B, S, H = 2, 8, 32
    key = jax.random.PRNGKey(0)
    kx, ky = jax.random.split(key)
    X = jax.random.normal(kx, (B, S, H), dtype=jnp.float32)
    Y = jax.random.normal(ky, (B, S, H), dtype=jnp.float32)

    # nn.LayerNorm(norm_shape=H) deterministic init: weight=1, bias=0.
    gamma = jnp.ones((H,), dtype=jnp.float32)
    beta = jnp.zeros((H,), dtype=jnp.float32)

    out = add_norm(X, Y, gamma, beta)
    out = jax.block_until_ready(out)

    ref = _reference(X, Y, gamma, beta)
    assert out.shape == (B, S, H)
    assert out.dtype == X.dtype
    assert jnp.max(jnp.abs(out - ref)) < 1e-4

    print("KERNEL_OK")
</pallas_src>

<mosaic_0001>
module attributes {stable_mosaic.version = 11 : i64} {
  func.func @_addnorm_kernel(%arg0: i32, %arg1: memref<8x32xf32, #tpu.memory_space<vmem>>, %arg2: memref<8x32xf32, #tpu.memory_space<vmem>>, %arg3: memref<1x32xf32, #tpu.memory_space<vmem>>, %arg4: memref<1x32xf32, #tpu.memory_space<vmem>>, %arg5: memref<8x32xf32, #tpu.memory_space<vmem>>) attributes {dimension_semantics = [#tpu.dimension_semantics<parallel>], iteration_bounds = array<i64: 2>, scalar_prefetch = 0 : i64, scratch_operands = 0 : i64, tpu.core_type = #tpu.core_type<tc>, window_params = [{transform_indices = @transform_0, window_bounds = array<i64: 8, 32>}, {transform_indices = @transform_1, window_bounds = array<i64: 8, 32>}, {pipeline_mode = #tpu.pipeline_mode<synchronous>, transform_indices = @transform_2, window_bounds = array<i64: 1, 32>}, {pipeline_mode = #tpu.pipeline_mode<synchronous>, transform_indices = @transform_3, window_bounds = array<i64: 1, 32>}, {transform_indices = @transform_4, window_bounds = array<i64: 8, 32>}]} {
    %c0 = arith.constant 0 : index
    %c0_0 = arith.constant 0 : index
    %0 = vector.load %arg1[%c0, %c0_0] : memref<8x32xf32, #tpu.memory_space<vmem>>, vector<8x32xf32>
    %c0_1 = arith.constant 0 : index
    %c0_2 = arith.constant 0 : index
    %1 = vector.load %arg2[%c0_1, %c0_2] : memref<8x32xf32, #tpu.memory_space<vmem>>, vector<8x32xf32>
    %2 = arith.addf %0, %1 : vector<8x32xf32>
    %cst = arith.constant dense<0.000000e+00> : vector<8xf32>
    %3 = vector.multi_reduction <add>, %2, %cst [1] : vector<8x32xf32> to vector<8xf32>
    %4 = vector.shape_cast %3 : vector<8xf32> to vector<8x1xf32>
    %cst_3 = arith.constant 3.200000e+01 : f32
    %5 = vector.broadcast %cst_3 : f32 to vector<8x1xf32>
    %6 = arith.divf %4, %5 : vector<8x1xf32>
    %7 = vector.broadcast %6 : vector<8x1xf32> to vector<8x32xf32>
    %8 = arith.subf %2, %7 : vector<8x32xf32>
    %9 = arith.mulf %8, %8 : vector<8x32xf32>
    %cst_4 = arith.constant dense<0.000000e+00> : vector<8xf32>
    %10 = vector.multi_reduction <add>, %9, %cst_4 [1] : vector<8x32xf32> to vector<8xf32>
    %11 = vector.shape_cast %10 : vector<8xf32> to vector<8x1xf32>
    %cst_5 = arith.constant 3.200000e+01 : f32
    %12 = vector.broadcast %cst_5 : f32 to vector<8x1xf32>
    %13 = arith.divf %11, %12 : vector<8x1xf32>
    %cst_6 = arith.constant 9.99999974E-6 : f32
    %14 = vector.broadcast %cst_6 : f32 to vector<8x1xf32>
    %15 = arith.addf %13, %14 : vector<8x1xf32>
    %16 = math.rsqrt %15 : vector<8x1xf32>
    %c0_7 = arith.constant 0 : index
    %c0_8 = arith.constant 0 : index
    %17 = vector.load %arg3[%c0_7, %c0_8] : memref<1x32xf32, #tpu.memory_space<vmem>>, vector<1x32xf32>
    %c0_9 = arith.constant 0 : index
    %c0_10 = arith.constant 0 : index
    %18 = vector.load %arg4[%c0_9, %c0_10] : memref<1x32xf32, #tpu.memory_space<vmem>>, vector<1x32xf32>
    %19 = vector.broadcast %16 : vector<8x1xf32> to vector<8x32xf32>
    %20 = vector.broadcast %17 : vector<1x32xf32> to vector<8x32xf32>
    %21 = arith.mulf %19, %20 : vector<8x32xf32>
    %22 = vector.broadcast %6 : vector<8x1xf32> to vector<8x32xf32>
    %23 = arith.mulf %22, %21 : vector<8x32xf32>
    %24 = vector.broadcast %18 : vector<1x32xf32> to vector<8x32xf32>
    %25 = arith.subf %24, %23 : vector<8x32xf32>
    %26 = arith.addf %0, %1 : vector<8x32xf32>
    %27 = arith.mulf %26, %21 : vector<8x32xf32>
    %28 = arith.addf %27, %25 : vector<8x32xf32>
    %c0_11 = arith.constant 0 : index
    %c0_12 = arith.constant 0 : index
    %29 = vector.load %arg5[%c0_11, %c0_12] : memref<8x32xf32, #tpu.memory_space<vmem>>, vector<8x32xf32>
    tpu.vector_store %arg5[%c0_11, %c0_12], %28 {strides = array<i32>} : memref<8x32xf32, #tpu.memory_space<vmem>>, vector<8x32xf32>,
    return
  }
  func.func @transform_0(%arg0: i32) -> (i32, i32) {
    %c0_i32 = arith.constant 0 : i32
    %c0_i32_0 = arith.constant 0 : i32
    return %arg0, %c0_i32 : i32, i32
  }
  func.func @transform_1(%arg0: i32) -> (i32, i32) {
    %c0_i32 = arith.constant 0 : i32
    %c0_i32_0 = arith.constant 0 : i32
    return %arg0, %c0_i32 : i32, i32
  }
  func.func @transform_2(%arg0: i32) -> (i32, i32) {
    %c0_i32 = arith.constant 0 : i32
    %c0_i32_0 = arith.constant 0 : i32
    %c0_i32_1 = arith.constant 0 : i32
    return %c0_i32, %c0_i32_0 : i32, i32
  }
  func.func @transform_3(%arg0: i32) -> (i32, i32) {
    %c0_i32 = arith.constant 0 : i32
    %c0_i32_0 = arith.constant 0 : i32
    %c0_i32_1 = arith.constant 0 : i32
    return %c0_i32, %c0_i32_0 : i32, i32
  }
  func.func @transform_4(%arg0: i32) -> (i32, i32) {
    %c0_i32 = arith.constant 0 : i32
    %c0_i32_0 = arith.constant 0 : i32
    return %arg0, %c0_i32 : i32, i32
  }
}

</mosaic_0001>

<bundles_post_ra>
// kernel: tpu_custom_call.1
= control target key start
LH: loop header
LB: loop body
LE: loop exit
PB: predicated region body
PF: predicated region fallthrough
CT: control target
= control target key end

     0   :  { %9 = vsyncpa [#allocation3], 0  ;;  %s826_s0 = inlined_call_operand.hbm [shape: f32[16,32], index: 0, kind: input, shape index: {}]   ;;  %s827_s1 = inlined_call_operand.hbm [shape: f32[16,32], index: 1, kind: input, shape index: {}]   ;;  %s828_s2 = inlined_call_operand.vmem [shape: f32[1,32], index: 2, kind: input, shape index: {}]   ;;  %s829_s3 = inlined_call_operand.vmem [shape: f32[1,32], index: 3, kind: input, shape index: {}]   ;;  %s830_s4 = inlined_call_operand.hbm [shape: f32[16,32], index: 4, kind: output, shape index: {}]  }
   0x1   :  { %11 = vsyncpa [#allocation3 + $0x1], 0 }
   0x2   :  { %12 = vsyncpa [#allocation6], 0 }
   0x3   :  { %14 = vsyncpa [#allocation6 + $0x1], 0 }
   0x4   :  { %15 = vsyncpa [#allocation4], 0 }
   0x5   :  { %17 = vsyncpa [#allocation4 + $0x1], 0  ;;  %s618_s15 = smov 0   ;;  %s620_s16 = smov 0  }
   0x6   :  { %s622_s17 = smov 0   ;;  %s624_s18 = smov 0  }
   0x7 LB: > { %s639_s19 = sadd.s32 4294967295, %s588_s18   ;;  %s394_s20 = sadd.s32 4294967294, %s588_s18   ;;  %s588_s18 = sphi %s624_s18, %s849_s18   ;;  %s584_s17 = sphi %s622_s17, %s848_s17   ;;  %s580_s16 = sphi %s620_s16, %s847_s16   ;;  %s576_s15 = sphi %s618_s15, %s846_s15  }
   0x8   : > { %s643_s21 = sadd.s32 1, %s588_s18   ;;  %s30_s22 = sadd.s32 1, %s584_s17 }
   0x9   : > { %s27_s23 = ssub.s32 %s588_s18, %s643_s21  ;;  %p37_p0 = scmp.ne.s32.totalorder %s584_s17, %s580_s16 }
   0xa   : > { %p28_p1 = scmp.eq.s32.totalorder %s27_s23, 0  ;;  %p38_p2 = scmp.eq.s32.totalorder %s588_s18, 0 }
   0xb   : > { %p43_p3 = scmp.ne.s32.totalorder %s580_s16, %s576_s15  ;;  %p44_p4 = scmp.eq.s32.totalorder %s639_s19, 0 }
   0xc   : > { %s655_s24 = scalar_select %p28_p1, %s584_s17, %s30_s22  }
   0xd   : > { %p657_p5 = por %p38_p2, %p37_p0  ;;  %p661_p6 = por %p44_p4, %p43_p3 }
   0xe   : > { %p135_p7 = scmp.eq.s32.totalorder %s639_s19, 1  ;;  %p141_p8 = scmp.eq.s32.totalorder %s394_s20, 1 }
   0xf   : > { %s834_s26 = scalar_select %p661_p6, 1, 0 }
  0x10   : > { %p428_p10 = scmp.lt.s32.totalorder %s588_s18, 2  ;;  %p668_p11 = por %p135_p7, %p37_p0 }
  0x11   : > { %p672_p12 = por %p141_p8, %p43_p3  ;;  %s677_s29 = sand.u32 1, %s584_s17  }
  0x12   : > { %s835_s27 = scalar_select %p668_p11, 1, 0 }
  0x13   : > { %s836_s28 = scalar_select %p672_p12, 1, 0 }
  0x14   : > { %s398_s30 = sshll.u32 %s588_s18, 7  ;;  %s397_s5 = sshll.u32 %s677_s29, 3 }
  0x15   : > { %s686_s8 = scalar_lea.hbm %s826_s0, %s398_s30  ;;  %s171_s9 = scalar_lea.vmem [#allocation2], %s397_s5 }
  0x16   : > { %s178_s10 = sshll.u32 %s171_s9, 4  ;;  %p692_p13 = pnand %p428_p10, %p657_p5  ;;  %s696_s10 = int_to_ptr.vmem [resolvable:$true] %s178_s10 }
  0x17   : > { %s168_s12 = scalar_lea.sflag [#allocation3], %s677_s29  ;;  %s464_s13 = scalar_lea.hbm %s686_s8, 128 }
  0x18   : > { %p465_p2 = scmp.ne.s32.totalorder %s686_s8, %s464_s13  ;;  %p466_p3 = pneg %p692_p13 }
  0x19   : > { %s469_s22 = scalar_lea.hbm %s826_s0, 256  ;;  %p470_p5 = scmp.lt.s32.totalorder %s686_s8, %s826_s0 }
  0x1a   : > { %p467_p4 = pnand %p466_p3, %p465_p2  ;;  %p471_p8 = scmp.lt.s32.totalorder %s469_s22, %s464_s13 }
  0x1c   : > { %p468_p7 = pneg %p467_p4  ;;  %p472_p10 = por %p471_p8, %p470_p5 }
  0x1e   : > { %p473_p9 = pnand %p472_p10, %p468_p7 }
  0x20   : > { %476 = shalt.err (!%p473_p9)
}
  0x21   : > { %s477_s6 = scalar_lea.vmem %s696_s10, 128  ;;  %s590_s7 = smov [#allocation2]  }
  0x22   : > { %p478_p0 = scmp.ne.s32.totalorder %s696_s10, %s477_s6  ;;  %s482_s9 = sshll.u32 %s590_s7, 4  ;;  %s483_s9 = int_to_ptr.vmem [resolvable:$false] %s482_s9 }
  0x23   : > { %s484_s14 = scalar_lea.vmem %s483_s9, 256  ;;  %p485_p1 = scmp.lt.s32.totalorder %s696_s10, %s483_s9 }
  0x24   : > { %p480_p2 = pnand %p478_p0, %p466_p3  ;;  %p486_p12 = scmp.lt.s32.totalorder %s484_s14, %s477_s6 }
  0x26   : > { %p481_p4 = pneg %p480_p2  ;;  %p487_p11 = por %p486_p12, %p485_p1 }
  0x28   : > { %p488_p5 = pnand %p487_p11, %p481_p4 }
  0x2a   : > { %491 = shalt.err (!%p488_p5)
}
  0x2b   : > { %420 = dma.hbm_to_vmem [thread:$0]  (!%p692_p13), %s686_s8, 128, %s696_s10, %s168_s12  }
  0x2c   : > { %p838_p9 = scmp.lt.s32.totalorder %s588_s18, 3  ;;  %p839_p0 = scmp.ge.s32.totalorder %s588_s18, 1 }
  0x2d   : > { %s738_s23 = scalar_lea.hbm %s827_s1, %s398_s30  ;;  %s189_s25 = scalar_lea.vmem [#allocation5], %s397_s5 }
  0x2e   : > { %p729_p7 = pnand %p839_p0, %p838_p9  ;;  %s196_s6 = sshll.u32 %s189_s25, 4  ;;  %s197_s6 = int_to_ptr.vmem [resolvable:$true] %s196_s6 }
  0x2f   : > { %s186_s8 = scalar_lea.sflag [#allocation6], %s677_s29  ;;  %s492_s10 = scalar_lea.hbm %s738_s23, 128 }
  0x30   : > { %s840_s13 = scalar_select %p729_p7, 1, 0 }
  0x31   : > { %p493_p11 = scmp.ne.s32.totalorder %s738_s23, %s492_s10  ;;  %s497_s9 = scalar_lea.hbm %s827_s1, 256 }
  0x32   : > { %p498_p8 = scmp.lt.s32.totalorder %s738_s23, %s827_s1  ;;  %p499_p10 = scmp.lt.s32.totalorder %s497_s9, %s492_s10 }
  0x33   : > { %p495_p12 = pnand %p493_p11, %p466_p3 }
  0x34   : > { %p500_p2 = por %p499_p10, %p498_p8 }
  0x35   : > { %p496_p1 = pneg %p495_p12 }
  0x37   : > { %p501_p4 = pnand %p500_p2, %p496_p1 }
  0x39   : > { %504 = shalt.err (!%p501_p4)
}
  0x3a   : > { %s505_s5 = scalar_lea.vmem %s197_s6, 128  ;;  %s591_s29 = smov [#allocation5]  }
  0x3b   : > { %p506_p5 = scmp.ne.s32.totalorder %s197_s6, %s505_s5  ;;  %s510_s20 = sshll.u32 %s591_s29, 4  ;;  %s511_s20 = int_to_ptr.vmem [resolvable:$false] %s510_s20 }
  0x3c   : > { %s512_s22 = scalar_lea.vmem %s511_s20, 256  ;;  %p513_p11 = scmp.lt.s32.totalorder %s197_s6, %s511_s20 }
  0x3d   : > { %p508_p9 = pnand %p506_p5, %p466_p3  ;;  %p514_p12 = scmp.lt.s32.totalorder %s512_s22, %s505_s5 }
  0x3f   : > { %p509_p0 = pneg %p508_p9  ;;  %p515_p6 = por %p514_p12, %p513_p11 }
  0x41   : > { %p516_p7 = pnand %p515_p6, %p509_p0 }
  0x43   : > { %519 = shalt.err (!%p516_p7)
}
  0x44   : > { %423 = dma.hbm_to_vmem [thread:$0]  (!%p692_p13), %s738_s23, 128, %s197_s6, %s186_s8  }
  0x45   : > { %p841_p1 = scmp.ne.s32.totalorder %s840_s13, 0 }
  0x46   : > { %s764_s25 = sand.u32 (!%p841_p1), 1, %s580_s16   ;;  %p842_p6 = scmp.ne.s32.totalorder (!%p841_p1), %s834_s26, 0 }
  0x47   : > { %205 = sbr.rel (%p841_p1) target bundleno = 405 (0x195), region = 36  ;;  %s767_s10 = sshll.u32 (!%p841_p1), %s764_s25, 3 }
  0x48   : > { %s208_s12 = scalar_lea.sflag (!%p841_p1), [#allocation3], %s764_s25  ;;  %s211_s7 = scalar_lea.vmem (!%p841_p1), [#allocation2], %s767_s10 }
  0x4c   : > { %563 = dma.done.wait (%p842_p6), %s208_s12, 128  }
  0x4d   : > { %565 = vsyncadd (%p842_p6), %s208_s12, 4294967168  ;;  %s217_s11 = scalar_lea.sflag [#allocation6], %s764_s25  ;;  %s220_s13 = scalar_lea.vmem [#allocation5], %s767_s10 }
  0x4e   : > { %567 = dma.done.wait (%p842_p6), %s217_s11, 128  }
  0x4f   : > { %569 = vsyncadd (%p842_p6), %s217_s11, 4294967168  ;;  %v250_v0 = vld [vmem:[%s211_s7] sm:$0xff]  ;;  %v251_v1 = vld [vmem:[%s220_s13] sm:$0xff]  ;;  %vm253_vm0 = vcmask 261120   ;;  %s408_s9 = sshll.u32 %s639_s19, 7  ;;  %s249_s30 = scalar_lea.vmem [#allocation7], %s767_s10 }
  0x50   : > { %v252_v2 = vadd.f32 %v251_v1, %v250_v0  ;;  %v405_v12 = vld [vmem:[%s828_s2] ss:$0 sm:$0xff]  ;;  %s301_s14 = sshll.u32 %s249_s30, 4  ;;  %s299_s20 = scalar_lea.hbm %s830_s4, %s408_s9  ;;  %s302_s14 = int_to_ptr.vmem [resolvable:$true] %s301_s14 }
  0x51   : > { %v406_v15 = vld [vmem:[%s829_s3] ss:$0 sm:$0xff]  ;;  %s288_s22 = scalar_lea.sflag [#allocation4], %s764_s25  ;;  %s520_s12 = scalar_lea.vmem %s302_s14, 128 }
  0x52   : > { %v254_v3 = vsel %vm253_vm0, %v252_v2, 0.0  ;;  %p521_p13 = scmp.ne.s32.totalorder %s302_s14, %s520_s12  ;;  %p843_p3 = scmp.ne.s32.totalorder %s835_s27, 0 }
  0x53   : > { %255 = vadd.xlane.f32.xlu0 %v254_v3  ;;  %s592_s7 = smov [#allocation7]  }
  0x54   : > { %p522_p7 = pnand %p521_p13, %p843_p3  ;;  %s524_s19 = sshll.u32 %s592_s7, 4  ;;  %s525_s19 = int_to_ptr.vmem [resolvable:$false] %s524_s19 }
  0x55   : > { %s526_s10 = scalar_lea.vmem %s525_s19, 256  ;;  %p527_p10 = scmp.lt.s32.totalorder %s302_s14, %s525_s19 }
  0x56   : > { %p523_p8 = pneg %p522_p7  ;;  %p528_p2 = scmp.lt.s32.totalorder %s526_s10, %s520_s12 }
  0x58   : > { %p529_p4 = por %p528_p2, %p527_p10 }
  0x5a   : > { %p530_p5 = pnand %p529_p4, %p523_p8 }
  0xdc   : > { %v256_v4 = vpop.xlane.xlu0 %255 }
  0xdd   : > { %v258_v5 = vmul.f32 0.03125, %v256_v4 }
  0xdf   : > { %v259_v6 = vsub.f32 %v252_v2, %v258_v5 }
  0xe1   : > { %v260_v7 = vmul.f32 %v259_v6, %v259_v6 }
  0xe3   : > { %v261_v8 = vsel %vm253_vm0, %v260_v7, 0.0 }
  0xe4   : > { %262 = vadd.xlane.f32.xlu0 %v261_v8 }
 0x16d   : > { %v263_v9 = vpop.xlane.xlu0 %262 }
 0x16e   : > { %v264_v10 = vmul.f32 0.03125, %v263_v9 }
 0x170   : > { %v265_v11 = vadd.f32 1e-05, %v264_v10 }
 0x172   : > { %462 = vrsqrt.f32 %v265_v11 }
 0x17f   : > { %v463_v13 = vpop.eup %462 }
 0x180   : > { %v275_v14 = vmul.f32 %v463_v13, %v405_v12 }
 0x182   : > { %v276_v16 = vmul.f32 %v275_v14, %v258_v5  ;;  %v284_v18 = vmul.f32 %v275_v14, %v252_v2 }
 0x184   : > { %v283_v17 = vsub.f32 %v406_v15, %v276_v16 }
 0x186   : > { %v285_v19 = vadd.f32 %v284_v18, %v283_v17 }
 0x188   : > { %286 = vst.msk [vmem:[%s249_s30] sm:$0xff] %vm253_vm0, %v285_v19 }
 0x189   : > { %533 = shalt.err (!%p530_p5)
}
 0x18a   : > { %s534_s11 = scalar_lea.hbm %s299_s20, 128  ;;  %s538_s26 = scalar_lea.hbm %s830_s4, 256 }
 0x18b   : > { %p535_p9 = scmp.ne.s32.totalorder %s299_s20, %s534_s11  ;;  %p539_p12 = scmp.lt.s32.totalorder %s299_s20, %s830_s4 }
 0x18c   : > { %p540_p1 = scmp.lt.s32.totalorder %s538_s26, %s534_s11 }
 0x18d   : > { %p536_p0 = pnand %p535_p9, %p843_p3 }
 0x18e   : > { %p541_p6 = por %p540_p1, %p539_p12 }
 0x18f   : > { %p537_p11 = pneg %p536_p0 }
 0x191   : > { %p542_p13 = pnand %p541_p6, %p537_p11 }
 0x193   : > { %545 = shalt.err (!%p542_p13)
}
 0x194   : > { %415 = dma.vmem_to_hbm [thread:$0]  (%p843_p3), %s302_s14, 128, %s299_s20, %s288_s22  }
 0x195 PF: > { %s313_s8 = sand.u32 1, %s576_s15   ;;  %p844_p7 = scmp.ne.s32.totalorder %s836_s28, 0 }
 0x196   : > { %p845_p8 = scmp.ge.s32.totalorder %s588_s18, 2  ;;  %s314_s9 = scalar_lea.sflag [#allocation4], %s313_s8 }
 0x198   : > { %p425_p10 = pnand %p845_p8, %p844_p7 }
 0x19a   : > { %p426_p2 = pneg %p425_p10 }
 0x19c   : > { %571 = dma.done.wait (%p426_p2), %s314_s9, 128  }
 0x19d   : > { %573 = vsyncadd (%p426_p2), %s314_s9, 4294967168  ;;  %p20_p4 = scmp.ge.s32.totalorder %s643_s21, 4   ;;  %s846_s15 = smov %s580_s16 }
 0x19e   : > { %s847_s16 = smov %s584_s17  ;;  %s848_s17 = smov %s655_s24 }
 0x19f   : > { %s849_s18 = smov %s643_s21  ;;  %22 = sbr.rel (!%p20_p4) target bundleno = 7 (0x7), region = 94 }
 0x1a4   :  { %319 = vsyncpa [#allocation3], 1 }
 0x1a5   :  { %321 = vsyncpa [#allocation3 + $0x1], 1 }
 0x1a6   :  { %322 = vsyncpa [#allocation6], 1 }
 0x1a7   :  { %324 = vsyncpa [#allocation6 + $0x1], 1 }
 0x1a8   :  { %325 = vsyncpa [#allocation4], 1 }
 0x1a9   :  { %327 = vsyncpa [#allocation4 + $0x1], 1 }

</bundles_post_ra>
